<compile_context>
chip_gen: v5e
topology: v5e:2x2
jax: 0.10.0
libtpu: 0.0.40
codegen_flags: <defaults>
</compile_context>

<pallas_src>
import functools

import jax
import jax.numpy as jnp
from jax import lax
from jax.experimental import pallas as pl
from jax.experimental.pallas import tpu as pltpu

LANE = 128
SUBLANE = 8
MAX_BLOCK_ROWS = 2048  # (2048, 128) f32 = 1 MiB per input block


def _ucb_kernel(mean_ref, var_ref, noise_ref, out_ref, acc_ref, *,
                scale, inv_n, inner, block_rows, valid_rows, needs_mask):
    j = pl.program_id(1)

    @pl.when(j == 0)
    def _():
        acc_ref[...] = jnp.zeros_like(acc_ref)

    m = mean_ref[...]
    v = var_ref[...]
    nz = noise_ref[...]
    # variance / sqrt(variance + noise) == variance * rsqrt(variance + noise)
    res = m + jnp.float32(scale) * (v * lax.rsqrt(v + nz))

    if needs_mask:
        # Only emitted when the grid over-covers the array (ragged / OOB tail).
        p = pl.program_id(0)
        b = p * inner + j
        row_ids = b * block_rows + lax.broadcasted_iota(jnp.int32, res.shape, 0)
        res = jnp.where(row_ids < valid_rows, res, jnp.float32(0.0))

    # Pure VPU accumulation in VMEM; pipelines cleanly behind the input DMAs.
    acc_ref[...] += res

    @pl.when(j == pl.num_programs(1) - 1)
    def _():
        out_ref[0, 0] = jnp.sum(acc_ref[...]) * jnp.float32(inv_n)


def ucb_nvucb(mean, variance, noise, *, beta=1.0, step_num=1, cost=1.0):
    """Pallas implementation of UCB_NVUCB.forward. Returns a scalar."""
    scale = float(beta) ** int(step_num) / float(cost)

    m = jnp.asarray(mean, jnp.float32).reshape(-1)
    v = jnp.asarray(variance, jnp.float32).reshape(-1)
    nz = jnp.asarray(noise, jnp.float32).reshape(-1)
    n = m.shape[0]

    # Round rows up to a sublane multiple so (rows, 128) is a legal layout.
    rows = -(-n // LANE)
    rows = -(-rows // SUBLANE) * SUBLANE
    padded_n = rows * LANE
    if padded_n != n:
        pad = padded_n - n
        # Smart pad values: mean=0, var=0, noise=1 -> contributes exactly 0.
        m = jnp.pad(m, (0, pad))
        v = jnp.pad(v, (0, pad))
        nz = jnp.pad(nz, (0, pad), constant_values=1.0)

    m2 = m.reshape(rows, LANE)
    v2 = v.reshape(rows, LANE)
    nz2 = nz.reshape(rows, LANE)

    block_rows = min(MAX_BLOCK_ROWS, rows)
    num_blocks = -(-rows // block_rows)
    outer = 2 if num_blocks >= 2 else 1       # megacore split (v7x)
    inner = -(-num_blocks // outer)

    # Does the (outer * inner) grid cover more rows than actually exist?
    needs_mask = (outer * inner * block_rows) != rows

    if outer * inner == num_blocks:
        def in_map(p, j):
            return (p * inner + j, 0)
    else:
        # Clamp fully-OOB block indices; their contribution is masked to 0.
        def in_map(p, j):
            return (jnp.minimum(p * inner + j, num_blocks - 1), 0)

    tile_spec = pl.BlockSpec((block_rows, LANE), in_map)

    kernel = functools.partial(
        _ucb_kernel, scale=scale, inv_n=1.0 / n, inner=inner,
        block_rows=block_rows, valid_rows=rows, needs_mask=needs_mask)

    partials = pl.pallas_call(
        kernel,
        out_shape=jax.ShapeDtypeStruct((outer, 1), jnp.float32),
        grid_spec=pltpu.PrefetchScalarGridSpec(
            num_scalar_prefetch=0,
            grid=(outer, inner),
            in_specs=[tile_spec, tile_spec, tile_spec],
            out_specs=pl.BlockSpec((1, 1), lambda p, j: (p, 0),
                                   memory_space=pltpu.SMEM),
            scratch_shapes=[pltpu.VMEM((block_rows, LANE), jnp.float32)],
        ),
        compiler_params=pltpu.CompilerParams(
            dimension_semantics=("parallel", "arbitrary"),
            vmem_limit_bytes=32 * 1024 * 1024),
    )(m2, v2, nz2)

    # Per-half partials are already scaled by 1/N; summing gives the mean.
    return jnp.sum(partials)


def ucb_nvucb_ref(mean, variance, noise, *, beta=1.0, step_num=1, cost=1.0):
    scale = float(beta) ** int(step_num) / float(cost)
    uncertainty = variance / jnp.sqrt(variance + noise)
    return jnp.mean(mean + scale * uncertainty)


if __name__ == "__main__":
    key = jax.random.PRNGKey(0)
    k1, k2, k3 = jax.random.split(key, 3)

    # Small NCHW-shaped inputs: batch=2, channels=4, spatial=16x16.
    shape = (2, 4, 16, 16)
    mean = jax.random.normal(k1, shape, dtype=jnp.float32)
    variance = jax.random.uniform(k2, shape, dtype=jnp.float32,
                                  minval=0.1, maxval=2.0)
    noise = jax.random.uniform(k3, shape, dtype=jnp.float32,
                               minval=0.01, maxval=0.5)

    result = ucb_nvucb(mean, variance, noise, beta=1.0, step_num=1, cost=1.0)
    result = jax.block_until_ready(result)

    expected = ucb_nvucb_ref(mean, variance, noise,
                             beta=1.0, step_num=1, cost=1.0)
    assert jnp.allclose(result, expected, atol=1e-5, rtol=1e-5), (
        f"mismatch: {result} vs {expected}")

    print("KERNEL_OK")
</pallas_src>

<mosaic_0001>
module attributes {stable_mosaic.version = 11 : i64} {
  func.func @_ucb_kernel(%arg0: i32, %arg1: i32, %arg2: memref<16x128xf32, #tpu.memory_space<vmem>>, %arg3: memref<16x128xf32, #tpu.memory_space<vmem>>, %arg4: memref<16x128xf32, #tpu.memory_space<vmem>>, %arg5: memref<1x1xf32, #tpu.memory_space<smem>>, %arg6: memref<16x128xf32, #tpu.memory_space<vmem>>) attributes {dimension_semantics = [#tpu.dimension_semantics<parallel>, #tpu.dimension_semantics<arbitrary>], iteration_bounds = array<i64: 1, 1>, scalar_prefetch = 0 : i64, scratch_operands = 1 : i64, tpu.core_type = #tpu.core_type<tc>, window_params = [{transform_indices = @transform_0, window_bounds = array<i64: 16, 128>}, {transform_indices = @transform_1, window_bounds = array<i64: 16, 128>}, {transform_indices = @transform_2, window_bounds = array<i64: 16, 128>}, {transform_indices = @transform_3, window_bounds = array<i64: 1, 1>}]} {
    %c0_i32 = arith.constant 0 : i32
    %0 = arith.cmpi eq, %arg1, %c0_i32 : i32
    %1 = arith.extui %0 : i1 to i32
    %c0_i32_0 = arith.constant 0 : i32
    %2 = arith.cmpi ne, %1, %c0_i32_0 : i32
    scf.if %2 {
      %cst_12 = arith.constant 0.000000e+00 : f32
      %18 = vector.broadcast %cst_12 : f32 to vector<16x128xf32>
      %c0_13 = arith.constant 0 : index
      %c0_14 = arith.constant 0 : index
      %19 = vector.load %arg6[%c0_13, %c0_14] : memref<16x128xf32, #tpu.memory_space<vmem>>, vector<16x128xf32>
      tpu.vector_store %arg6[%c0_13, %c0_14], %18 {strides = array<i32>} : memref<16x128xf32, #tpu.memory_space<vmem>>, vector<16x128xf32>,
    } else {
    }
    %c0 = arith.constant 0 : index
    %c0_1 = arith.constant 0 : index
    %3 = vector.load %arg2[%c0, %c0_1] : memref<16x128xf32, #tpu.memory_space<vmem>>, vector<16x128xf32>
    %c0_2 = arith.constant 0 : index
    %c0_3 = arith.constant 0 : index
    %4 = vector.load %arg3[%c0_2, %c0_3] : memref<16x128xf32, #tpu.memory_space<vmem>>, vector<16x128xf32>
    %c0_4 = arith.constant 0 : index
    %c0_5 = arith.constant 0 : index
    %5 = vector.load %arg4[%c0_4, %c0_5] : memref<16x128xf32, #tpu.memory_space<vmem>>, vector<16x128xf32>
    %6 = arith.addf %4, %5 : vector<16x128xf32>
    %7 = math.rsqrt %6 : vector<16x128xf32>
    %8 = arith.mulf %4, %7 : vector<16x128xf32>
    %cst = arith.constant 1.000000e+00 : f32
    %9 = vector.broadcast %cst : f32 to vector<16x128xf32>
    %10 = arith.mulf %9, %8 : vector<16x128xf32>
    %11 = arith.addf %3, %10 : vector<16x128xf32>
    %c0_6 = arith.constant 0 : index
    %c0_7 = arith.constant 0 : index
    %12 = vector.load %arg6[%c0_6, %c0_7] : memref<16x128xf32, #tpu.memory_space<vmem>>, vector<16x128xf32>
    %13 = arith.addf %12, %11 : vector<16x128xf32>
    %c0_8 = arith.constant 0 : index
    %c0_9 = arith.constant 0 : index
    %14 = vector.load %arg6[%c0_8, %c0_9] : memref<16x128xf32, #tpu.memory_space<vmem>>, vector<16x128xf32>
    tpu.vector_store %arg6[%c0_8, %c0_9], %13 {strides = array<i32>} : memref<16x128xf32, #tpu.memory_space<vmem>>, vector<16x128xf32>,
    %c0_i32_10 = arith.constant 0 : i32
    %15 = arith.cmpi eq, %arg1, %c0_i32_10 : i32
    %16 = arith.extui %15 : i1 to i32
    %c0_i32_11 = arith.constant 0 : i32
    %17 = arith.cmpi ne, %16, %c0_i32_11 : i32
    scf.if %17 {
      %c0_12 = arith.constant 0 : index
      %c0_13 = arith.constant 0 : index
      %18 = vector.load %arg6[%c0_12, %c0_13] : memref<16x128xf32, #tpu.memory_space<vmem>>, vector<16x128xf32>
      %19 = vector.shape_cast %18 : vector<16x128xf32> to vector<1x16x128xf32>
      %cst_14 = arith.constant dense<0.000000e+00> : vector<1xf32>
      %20 = vector.multi_reduction <add>, %19, %cst_14 [1, 2] : vector<1x16x128xf32> to vector<1xf32>
      %21 = vector.shape_cast %20 : vector<1xf32> to vector<1x1x1xf32>
      %22 = vector.extract %21[0, 0, 0] : f32 from vector<1x1x1xf32>
      %cst_15 = arith.constant 4.8828125E-4 : f32
      %23 = arith.mulf %22, %cst_15 : f32
      %c0_16 = arith.constant 0 : index
      %c0_17 = arith.constant 0 : index
      %24 = memref.load %arg5[%c0_16, %c0_17] : memref<1x1xf32, #tpu.memory_space<smem>>
      memref.store %23, %arg5[%c0_16, %c0_17] : memref<1x1xf32, #tpu.memory_space<smem>>
    } else {
    }
    return
  }
  func.func @transform_0(%arg0: i32, %arg1: i32) -> (i32, i32) {
    %c1_i32 = arith.constant 1 : i32
    %0 = arith.muli %arg0, %c1_i32 : i32
    %1 = arith.addi %0, %arg1 : i32
    %c0_i32 = arith.constant 0 : i32
    %c0_i32_0 = arith.constant 0 : i32
    return %1, %c0_i32 : i32, i32
  }
  func.func @transform_1(%arg0: i32, %arg1: i32) -> (i32, i32) {
    %c1_i32 = arith.constant 1 : i32
    %0 = arith.muli %arg0, %c1_i32 : i32
    %1 = arith.addi %0, %arg1 : i32
    %c0_i32 = arith.constant 0 : i32
    %c0_i32_0 = arith.constant 0 : i32
    return %1, %c0_i32 : i32, i32
  }
  func.func @transform_2(%arg0: i32, %arg1: i32) -> (i32, i32) {
    %c1_i32 = arith.constant 1 : i32
    %0 = arith.muli %arg0, %c1_i32 : i32
    %1 = arith.addi %0, %arg1 : i32
    %c0_i32 = arith.constant 0 : i32
    %c0_i32_0 = arith.constant 0 : i32
    return %1, %c0_i32 : i32, i32
  }
  func.func @transform_3(%arg0: i32, %arg1: i32) -> (i32, i32) {
    %c0_i32 = arith.constant 0 : i32
    %c0_i32_0 = arith.constant 0 : i32
    return %arg0, %c0_i32 : i32, i32
  }
}

</mosaic_0001>

<bundles_post_ra>
// kernel: tpu_custom_call.1
= control target key start
LH: loop header
LB: loop body
LE: loop exit
PB: predicated region body
PF: predicated region fallthrough
CT: control target
= control target key end

     0   :  { %8 = vsyncpa [#allocation4], 0  ;;  %s299_s0 = inlined_call_operand.hbm [shape: f32[16,128], index: 0, kind: input, shape index: {}]   ;;  %s300_s1 = inlined_call_operand.hbm [shape: f32[16,128], index: 1, kind: input, shape index: {}]   ;;  %s301_s2 = inlined_call_operand.hbm [shape: f32[16,128], index: 2, kind: input, shape index: {}]   ;;  %s302_s3 = inlined_call_operand.hbm [shape: f32[1,1], index: 3, kind: output, shape index: {}]  }
   0x1   :  { %9 = vsyncpa [#allocation7], 0 }
   0x2   :  { %10 = vsyncpa [#allocation5], 0  ;;  %s36_s14 = sshll.u32 %s300_s1, 4  ;;  %s261_s15 = smov [#allocation6]   ;;  %s37_s14 = int_to_ptr.hbm [resolvable:$true] %s36_s14 }
   0x3   :  { %s38_s16 = sshll.u32 %s261_s15, 4  ;;  %s19_s19 = sshll.u32 %s299_s0, 4  ;;  %s39_s16 = int_to_ptr.vmem [resolvable:$true] %s38_s16  ;;  %s20_s19 = int_to_ptr.hbm [resolvable:$true] %s19_s19 }
   0x4   :  { %s262_s20 = smov 128   ;;  %s263_s21 = smov 8  }
   0x5   :  { %44 = dma.hbm_to_vmem [thread:$0]  %s37_s14, 256, %s39_s16, [#allocation7], %s262_s20, %s262_s20, %s263_s21  }
   0x6   :  { %s264_s22 = smov [#allocation3]   ;;  %s53_s26 = sshll.u32 %s301_s2, 4  ;;  %s54_s26 = int_to_ptr.hbm [resolvable:$true] %s53_s26 }
   0x7   :  { %s21_s23 = sshll.u32 %s264_s22, 4  ;;  %s265_s1 = smov [#allocation8]   ;;  %s22_s23 = int_to_ptr.vmem [resolvable:$true] %s21_s23 }
   0x8   :  { %27 = dma.hbm_to_vmem [thread:$0]  %s20_s19, 256, %s22_s23, [#allocation4], %s262_s20, %s262_s20, %s263_s21  }
   0x9   :  { %s55_s27 = sshll.u32 %s265_s1, 4  ;;  %s56_s27 = int_to_ptr.vmem [resolvable:$true] %s55_s27 }
   0xa   :  { %61 = dma.hbm_to_vmem [thread:$0]  %s54_s26, 256, %s56_s27, [#allocation7], %s262_s20, %s262_s20, %s263_s21  }
   0xb   :  { %255 = dma.done.wait [#allocation4], 256  }
   0xc   :  { %256 = vsyncadd [#allocation4], 4294967040 }
   0xd   :  { %257 = dma.done.wait [#allocation7], 512  }
   0xe   :  { %258 = vsyncadd [#allocation7], 4294966784  ;;  %v88_v0 = vld [vmem:[#allocation6] sm:$0xff]  ;;  %v89_v1 = vld [vmem:[#allocation6 + $0x8] sm:$0xff]  ;;  %s147_s28 = sshll.u32 %s302_s3, 4  ;;  %s266_s4 = smov [#allocation9]   ;;  %s148_s28 = int_to_ptr.hbm [resolvable:$true] %s147_s28 }
   0xf   :  { %v90_v2 = vld [vmem:[#allocation8] sm:$0xff]  ;;  %v91_v3 = vld [vmem:[#allocation8 + $0x8] sm:$0xff] }
  0x10   :  { %v92_v4 = vadd.f32 %v90_v2, %v88_v0  ;;  %v93_v5 = vadd.f32 %v91_v3, %v89_v1  ;;  %v86_v18 = vld [vmem:[#allocation3] sm:$0xff]  ;;  %v87_v20 = vld [vmem:[#allocation3 + $0x8] sm:$0xff] }
  0x12   :  { %167 = vrsqrt.f32 %v92_v4  ;;  %vm100_vm0 = vweird.f32 %v92_v4  ;;  %vm110_vm2 = vweird.f32 %v93_v5 }
  0x13   :  { %169 = vrsqrt.f32 %v93_v5 }
  0x18   :  { %v168_v6 = vpop.eup %167 }
  0x19   :  { %v170_v7 = vpop.eup %169  ;;  %v95_v8 = vmul.f32 %v168_v6, %v92_v4  ;;  %vm101_vm1 = vweird.f32 %v168_v6 }
  0x1a   :  { %v105_v9 = vmul.f32 %v170_v7, %v93_v5  ;;  %vm111_vm3 = vweird.f32 %v170_v7  ;;  %vm102_vm4 = vmor %vm100_vm0, %vm101_vm1 }
  0x1b   :  { %v96_v10 = vmul.f32 %v168_v6, %v95_v8  ;;  %vm112_vm5 = vmor %vm110_vm2, %vm111_vm3 }
  0x1c   :  { %v106_v11 = vmul.f32 %v170_v7, %v105_v9 }
  0x1d   :  { %v97_v12 = vmul.f32 0.5, %v96_v10 }
  0x1e   :  { %v107_v13 = vmul.f32 0.5, %v106_v11 }
  0x1f   :  { %v98_v14 = vsub.f32 1.5, %v97_v12 }
  0x20   :  { %v108_v15 = vsub.f32 1.5, %v107_v13 }
  0x21   :  { %v99_v16 = vmul.f32 %v168_v6, %v98_v14 }
  0x22   :  { %v109_v17 = vmul.f32 %v170_v7, %v108_v15 }
  0x23   :  { %v103_v19 = vsel %vm102_vm4, %v168_v6, %v99_v16 }
  0x24   :  { %v113_v21 = vsel %vm112_vm5, %v170_v7, %v109_v17  ;;  %v114_v22 = vmul.f32 %v103_v19, %v88_v0 }
  0x25   :  { %v115_v23 = vmul.f32 %v113_v21, %v89_v1 }
  0x26   :  { %v116_v24 = vadd.f32 %v114_v22, %v86_v18 }
  0x27   :  { %v117_v25 = vadd.f32 %v115_v23, %v87_v20 }
  0x29   :  { %v129_v26 = vadd.f32 %v117_v25, %v116_v24 }
  0x2b   :  { %130 = vadd.xlane.f32.xlu0 %v129_v26 }
  0x9e   :  { %v131_v27 = vpop.xlane.xlu0 %130 }
  0x9f   :  { %v132_v28 = vrot.slane %v131_v27, 4 }
  0xa1   :  { %v133_v29 = vadd.f32 %v132_v28, %v131_v27 }
  0xa3   :  { %v134_v30 = vrot.slane %v133_v29, 2 }
  0xa5   :  { %v135_v31 = vadd.f32 %v134_v30, %v133_v29 }
  0xa7   :  { %v136_v32 = vrot.slane %v135_v31, 1 }
  0xa9   :  { %v137_v33 = vadd.f32 %v136_v32, %v135_v31 }
  0xab   :  { %159 = vpush %v137_v33 }
  0xdc   :  { %s160_s29 = spop %159 }
  0xdd   :  { %s139_s30 = smul.f32 0.00048828125, %s160_s29 }
  0xdf   :  { %141 = sst [smem:[#allocation9]] %s139_s30 }
  0xe0   :  { %150 = dma.smem_to_hbm %s266_s4, 16, %s148_s28, [#allocation5]  }
  0xe1   :  { %259 = dma.done.wait [#allocation5], 16  }
  0xe2   :  { %260 = vsyncadd [#allocation5], 4294967280 }
  0xe3   :  { %155 = sfence }
  0xe4   :  { %156 = vsyncpa [#allocation4], 1 }
  0xe5   :  { %157 = vsyncpa [#allocation7], 1 }
  0xe6   :  { %158 = vsyncpa [#allocation5], 1 }

</bundles_post_ra>
